<compile_context>
chip_gen: v7x
topology: tpu7x:2x2x1
jax: 0.10.0
libtpu: 0.0.40
codegen_flags: <defaults>
</compile_context>

<pallas_src>
import functools

import jax
import jax.numpy as jnp
from jax import lax
from jax.experimental import pallas as pl
from jax.experimental.pallas import tpu as pltpu

EPS = 1e-3


def _bn_fused_kernel(x_ref, gamma_ref, beta_ref, o_ref, *, inv_count):
    # x_ref:     (N, CG, S) block for channel group g = program_id(0)
    # gamma_ref: (1, CG, 1), beta_ref: (1, CG, 1)
    # o_ref:     (N, CG, S)
    x = x_ref[...].astype(jnp.float32)

    # One-pass per-channel statistics (no full-size centered temporaries).
    ssum = jnp.sum(x, axis=2, keepdims=True)       # (N, CG, 1) lane reduce (XLU)
    ssq = jnp.sum(x * x, axis=2, keepdims=True)    # (N, CG, 1)
    ssum = jnp.sum(ssum, axis=0, keepdims=True)    # (1, CG, 1)
    ssq = jnp.sum(ssq, axis=0, keepdims=True)      # (1, CG, 1)

    mean = ssum * inv_count
    # Biased variance (PyTorch BN normalizes with the biased estimate); clamp to
    # guard against slight negative values from E[x^2] - mean^2 cancellation.
    var = jnp.maximum(ssq * inv_count - mean * mean, 0.0)
    inv_std = lax.rsqrt(var + EPS)

    scale = gamma_ref[...].astype(jnp.float32) * inv_std          # (1, CG, 1)
    shift = beta_ref[...].astype(jnp.float32) - mean * scale      # (1, CG, 1)

    # Normalize straight from the resident VMEM tile (one mul + one add / elem).
    o_ref[...] = (x * scale + shift).astype(o_ref.dtype)


def batchnorm2d(x_nchw, gamma, beta):
    """Training-mode BatchNorm2d forward. x_nchw: (N, C, H, W); gamma/beta: (C,)."""
    n, c, h, w = x_nchw.shape
    s = h * w
    # Contiguous-dim collapse only — no transpose, no extra HBM pass.
    x3 = x_nchw.reshape(n, c, s)
    gamma3 = gamma.reshape(1, c, 1)
    beta3 = beta.reshape(1, c, 1)
    inv_count = 1.0 / float(n * s)

    # Channel groups are fully independent -> leading "parallel" grid axis
    # (lets v7x's 2 TensorCores split the work; harmless on single-TC v5e/v6e).
    cgroups = 2 if (c % 2 == 0 and (c // 2) % 8 == 0) else 1
    cg = c // cgroups

    out3 = pl.pallas_call(
        functools.partial(_bn_fused_kernel, inv_count=inv_count),
        out_shape=jax.ShapeDtypeStruct((n, c, s), x3.dtype),
        grid_spec=pltpu.PrefetchScalarGridSpec(
            num_scalar_prefetch=0,
            grid=(cgroups,),
            in_specs=[
                pl.BlockSpec((n, cg, s), lambda g: (0, g, 0)),
                pl.BlockSpec((1, cg, 1), lambda g: (0, g, 0)),
                pl.BlockSpec((1, cg, 1), lambda g: (0, g, 0)),
            ],
            out_specs=pl.BlockSpec((n, cg, s), lambda g: (0, g, 0)),
        ),
        compiler_params=pltpu.CompilerParams(
            dimension_semantics=("parallel",),
            vmem_limit_bytes=32 * 1024 * 1024,
        ),
    )(x3, gamma3, beta3)

    return out3.reshape(n, c, h, w)


if __name__ == "__main__":
    key = jax.random.PRNGKey(0)
    # Module spec: BatchNorm2d(128) applied to a (1, 128, 14, 14) tensor.
    N, C, H, W = 1, 128, 14, 14
    x = jax.random.normal(key, (N, C, H, W), dtype=jnp.float32)

    # nn.BatchNorm2d default affine init (weight=1, bias=0).
    gamma = jnp.ones((C,), dtype=jnp.float32)
    beta = jnp.zeros((C,), dtype=jnp.float32)

    out = batchnorm2d(x, gamma, beta)
    jax.block_until_ready(out)

    # Plain-JAX training-mode BN reference (batch stats, biased variance).
    mean = jnp.mean(x, axis=(0, 2, 3), keepdims=True)
    var = jnp.mean((x - mean) ** 2, axis=(0, 2, 3), keepdims=True)
    ref = (x - mean) / jnp.sqrt(var + EPS) * gamma.reshape(1, C, 1, 1) + beta.reshape(1, C, 1, 1)

    assert out.shape == (N, C, H, W)
    assert jnp.max(jnp.abs(out - ref)) < 1e-4

    print("KERNEL_OK")
</pallas_src>

<mosaic_0001>
module attributes {stable_mosaic.version = 11 : i64} {
  func.func @_bn_fused_kernel(%arg0: i32, %arg1: memref<1x64x196xf32, #tpu.memory_space<vmem>>, %arg2: memref<1x64x1xf32, #tpu.memory_space<vmem>>, %arg3: memref<1x64x1xf32, #tpu.memory_space<vmem>>, %arg4: memref<1x64x196xf32, #tpu.memory_space<vmem>>) attributes {dimension_semantics = [#tpu.dimension_semantics<parallel>], iteration_bounds = array<i64: 2>, scalar_prefetch = 0 : i64, scratch_operands = 0 : i64, tpu.core_type = #tpu.core_type<tc>, window_params = [{transform_indices = @transform_0, window_bounds = array<i64: 1, 64, 196>}, {transform_indices = @transform_1, window_bounds = array<i64: 1, 64, 1>}, {transform_indices = @transform_2, window_bounds = array<i64: 1, 64, 1>}, {transform_indices = @transform_3, window_bounds = array<i64: 1, 64, 196>}]} {
    %c0 = arith.constant 0 : index
    %c0_0 = arith.constant 0 : index
    %c0_1 = arith.constant 0 : index
    %0 = vector.load %arg1[%c0, %c0_0, %c0_1] : memref<1x64x196xf32, #tpu.memory_space<vmem>>, vector<1x64x196xf32>
    %cst = arith.constant dense<0.000000e+00> : vector<1x64xf32>
    %1 = vector.multi_reduction <add>, %0, %cst [2] : vector<1x64x196xf32> to vector<1x64xf32>
    %2 = vector.shape_cast %1 : vector<1x64xf32> to vector<1x64x1xf32>
    %3 = arith.mulf %0, %0 : vector<1x64x196xf32>
    %cst_2 = arith.constant dense<0.000000e+00> : vector<1x64xf32>
    %4 = vector.multi_reduction <add>, %3, %cst_2 [2] : vector<1x64x196xf32> to vector<1x64xf32>
    %5 = vector.shape_cast %4 : vector<1x64xf32> to vector<1x64x1xf32>
    %cst_3 = arith.constant dense<0.000000e+00> : vector<64x1xf32>
    %6 = vector.multi_reduction <add>, %2, %cst_3 [0] : vector<1x64x1xf32> to vector<64x1xf32>
    %7 = vector.shape_cast %6 : vector<64x1xf32> to vector<1x64x1xf32>
    %cst_4 = arith.constant dense<0.000000e+00> : vector<64x1xf32>
    %8 = vector.multi_reduction <add>, %5, %cst_4 [0] : vector<1x64x1xf32> to vector<64x1xf32>
    %9 = vector.shape_cast %8 : vector<64x1xf32> to vector<1x64x1xf32>
    %cst_5 = arith.constant 0.00510204071 : f32
    %10 = vector.broadcast %cst_5 : f32 to vector<1x64x1xf32>
    %11 = arith.mulf %7, %10 : vector<1x64x1xf32>
    %cst_6 = arith.constant 0.00510204071 : f32
    %12 = vector.broadcast %cst_6 : f32 to vector<1x64x1xf32>
    %13 = arith.mulf %9, %12 : vector<1x64x1xf32>
    %14 = arith.mulf %11, %11 : vector<1x64x1xf32>
    %15 = arith.subf %13, %14 : vector<1x64x1xf32>
    %cst_7 = arith.constant 0.000000e+00 : f32
    %16 = vector.broadcast %cst_7 : f32 to vector<1x64x1xf32>
    %17 = arith.maximumf %15, %16 : vector<1x64x1xf32>
    %cst_8 = arith.constant 1.000000e-03 : f32
    %18 = vector.broadcast %cst_8 : f32 to vector<1x64x1xf32>
    %19 = arith.addf %17, %18 : vector<1x64x1xf32>
    %20 = math.rsqrt %19 : vector<1x64x1xf32>
    %c0_9 = arith.constant 0 : index
    %c0_10 = arith.constant 0 : index
    %c0_11 = arith.constant 0 : index
    %21 = vector.load %arg2[%c0_9, %c0_10, %c0_11] : memref<1x64x1xf32, #tpu.memory_space<vmem>>, vector<1x64x1xf32>
    %22 = arith.mulf %21, %20 : vector<1x64x1xf32>
    %c0_12 = arith.constant 0 : index
    %c0_13 = arith.constant 0 : index
    %c0_14 = arith.constant 0 : index
    %23 = vector.load %arg3[%c0_12, %c0_13, %c0_14] : memref<1x64x1xf32, #tpu.memory_space<vmem>>, vector<1x64x1xf32>
    %24 = arith.mulf %11, %22 : vector<1x64x1xf32>
    %25 = arith.subf %23, %24 : vector<1x64x1xf32>
    %26 = vector.broadcast %22 : vector<1x64x1xf32> to vector<1x64x196xf32>
    %27 = arith.mulf %0, %26 : vector<1x64x196xf32>
    %28 = vector.broadcast %25 : vector<1x64x1xf32> to vector<1x64x196xf32>
    %29 = arith.addf %27, %28 : vector<1x64x196xf32>
    %c0_15 = arith.constant 0 : index
    %c0_16 = arith.constant 0 : index
    %c0_17 = arith.constant 0 : index
    %30 = vector.load %arg4[%c0_15, %c0_16, %c0_17] : memref<1x64x196xf32, #tpu.memory_space<vmem>>, vector<1x64x196xf32>
    tpu.vector_store %arg4[%c0_15, %c0_16, %c0_17], %29 {strides = array<i32>} : memref<1x64x196xf32, #tpu.memory_space<vmem>>, vector<1x64x196xf32>,
    return
  }
  func.func @transform_0(%arg0: i32) -> (i32, i32, i32) {
    %c0_i32 = arith.constant 0 : i32
    %c0_i32_0 = arith.constant 0 : i32
    %c0_i32_1 = arith.constant 0 : i32
    return %c0_i32, %arg0, %c0_i32_0 : i32, i32, i32
  }
  func.func @transform_1(%arg0: i32) -> (i32, i32, i32) {
    %c0_i32 = arith.constant 0 : i32
    %c0_i32_0 = arith.constant 0 : i32
    %c0_i32_1 = arith.constant 0 : i32
    return %c0_i32, %arg0, %c0_i32_0 : i32, i32, i32
  }
  func.func @transform_2(%arg0: i32) -> (i32, i32, i32) {
    %c0_i32 = arith.constant 0 : i32
    %c0_i32_0 = arith.constant 0 : i32
    %c0_i32_1 = arith.constant 0 : i32
    return %c0_i32, %arg0, %c0_i32_0 : i32, i32, i32
  }
  func.func @transform_3(%arg0: i32) -> (i32, i32, i32) {
    %c0_i32 = arith.constant 0 : i32
    %c0_i32_0 = arith.constant 0 : i32
    %c0_i32_1 = arith.constant 0 : i32
    return %c0_i32, %arg0, %c0_i32_0 : i32, i32, i32
  }
}

</mosaic_0001>

<bundles_post_ra>
// kernel: tpu_custom_call.1
= control target key start
LH: loop header
LB: loop body
LE: loop exit
PB: predicated region body
PF: predicated region fallthrough
CT: control target
= control target key end

     0   :  { %s717_s12 = smov 0   ;;  %s964_s0 = inlined_call_operand.vmem [shape: f32[1,128,196], index: 0, kind: input, shape index: {}]   ;;  %s965_s1 = inlined_call_operand.vmem [shape: f32[1,128,1], index: 1, kind: input, shape index: {}]   ;;  %s966_s2 = inlined_call_operand.vmem [shape: f32[1,128,1], index: 2, kind: input, shape index: {}]   ;;  %s967_s3 = inlined_call_operand.vmem [shape: f32[1,128,196], index: 3, kind: output, shape index: {}]  }
   0x1 LB: > { %s642_s13 = sadd.s32 4294967295, %s694_s12   ;;  %p646_p0 = scmp.ge.s32.totalorder %s694_s12, 1  ;;  %s694_s12 = sphi %s717_s12, %s13_s12  }
   0x2   : > { %p161_p1 = scmp.lt.s32.totalorder %s694_s12, 3 }
   0x4   : > { %p162_p2 = pnand %p646_p0, %p161_p1 }
   0x5   : > { %s647_s14 = sshll.u32 (!%p162_p2), %s642_s13, 3  ;;  %vm239_vm0 = vcmask (!%p162_p2), 556032  }
   0x6   : > { %165 = sbr.rel (%p162_p2) target bundleno = 371 (0x173), region = 32  ;;  %p198_p3 = scmp.lt.s32.totalorder (!%p162_p2), %s647_s14, 15 }
   0xd   : > { %s969_s14 = smov (!%p198_p3, %s647_s14), 15 }
   0xe   : > { %s659_s15 = sshll.u32 %s969_s14, 4  ;;  %s651_s19 = sshll.u32 %s969_s14, 3 }
   0xf   : > { %s733_s18 = scalar_lea.vmem %s964_s0, %s659_s15  ;;  %s883_s22 = scalar_lea.vmem %s965_s1, %s651_s19 }
  0x10   : > { %v736_v0 = vld [vmem:[%s733_s18 + $0x20] sm:$0xff]  ;;  %v739_v1 = vld [vmem:[%s733_s18 + $0x28] sm:$0xff]  ;;  %v750_v5 = vld [vmem:[%s733_s18 + $0x30] sm:$0xff]  ;;  %s890_s25 = scalar_lea.vmem %s966_s2, %s651_s19  ;;  %s921_s28 = scalar_lea.vmem %s967_s3, %s659_s15 }
  0x11   : > { %v742_v2 = vld [vmem:[%s733_s18] sm:$0xff]  ;;  %v248_v3 = vsel %vm239_vm0, %v739_v1, 0.0  ;;  %v747_v4 = vld [vmem:[%s733_s18 + $0x8] sm:$0xff]  ;;  %v753_v6 = vld [vmem:[%s733_s18 + $0x38] sm:$0xff]  ;;  %v277_v39 = vmul.f32 %v739_v1, %v739_v1  ;;  %v278_v41 = vmul.f32 %v750_v5, %v750_v5  ;;  %v276_v44 = vmul.f32 %v736_v0, %v736_v0 }
  0x12   : > { %v249_v7 = vadd.f32 %v248_v3, %v736_v0  ;;  %v240_v8 = vsel %vm239_vm0, %v747_v4, 0.0  ;;  %v252_v9 = vsel %vm239_vm0, %v753_v6, 0.0  ;;  %v761_v10 = vld [vmem:[%s733_s18 + $0x10] sm:$0xff]  ;;  %v764_v11 = vld [vmem:[%s733_s18 + $0x18] sm:$0xff]  ;;  %v773_v15 = vld [vmem:[%s733_s18 + $0x48] sm:$0xff]  ;;  %v273_v31 = vmul.f32 %v747_v4, %v747_v4 }
  0x13   : > { %v241_v12 = vadd.f32 %v240_v8, %v742_v2  ;;  %v244_v13 = vsel %vm239_vm0, %v764_v11, 0.0  ;;  %v770_v14 = vld [vmem:[%s733_s18 + $0x58] sm:$0xff]  ;;  %v253_v16 = vadd.f32 %v252_v9, %v750_v5  ;;  %v778_v18 = vld [vmem:[%s733_s18 + $0x50] sm:$0xff]  ;;  %v783_v20 = vld [vmem:[%s733_s18 + $0x40] sm:$0xff]  ;;  %v256_v21 = vsel %vm239_vm0, %v773_v15, 0.0 }
  0x14   : > { %250 = vadd.xlane.f32.xlu1 %v249_v7  ;;  %v245_v17 = vadd.f32 %v244_v13, %v761_v10  ;;  %v260_v19 = vsel %vm239_vm0, %v770_v14, 0.0  ;;  %v788_v22 = vld [vmem:[%s733_s18 + $0x78] sm:$0xff]  ;;  %v791_v23 = vld [vmem:[%s733_s18 + $0x68] sm:$0xff]  ;;  %v257_v25 = vadd.f32 %v256_v21, %v783_v20  ;;  %v796_v26 = vld [vmem:[%s733_s18 + $0x70] sm:$0xff]  ;;  %v275_v28 = vmul.f32 %v764_v11, %v764_v11 }
  0x15   : > { %242 = vadd.xlane.f32.xlu0 %v241_v12  ;;  %v261_v24 = vadd.f32 %v260_v19, %v778_v18  ;;  %v268_v27 = vsel %vm239_vm0, %v788_v22, 0.0  ;;  %v803_v29 = vld [vmem:[%s733_s18 + $0x60] sm:$0xff]  ;;  %v264_v30 = vsel %vm239_vm0, %v791_v23, 0.0  ;;  %v274_v33 = vmul.f32 %v761_v10, %v761_v10 }
  0x16   : > { %v269_v32 = vadd.f32 %v268_v27, %v796_v26  ;;  %v265_v34 = vadd.f32 %v264_v30, %v803_v29  ;;  %v292_v35 = vsel %vm239_vm0, %v275_v28, 0.0  ;;  %v272_v36 = vmul.f32 %v742_v2, %v742_v2 }
  0x17   : > { %v279_v37 = vmul.f32 %v753_v6, %v753_v6  ;;  %v288_v38 = vsel %vm239_vm0, %v273_v31, 0.0  ;;  %v293_v40 = vadd.f32 %v292_v35, %v274_v33  ;;  %v283_v45 = vmul.f32 %v770_v14, %v770_v14 }
  0x18   : > { %254 = vadd.xlane.f32.xlu1 %v253_v16  ;;  %v289_v42 = vadd.f32 %v288_v38, %v272_v36  ;;  %v296_v46 = vsel %vm239_vm0, %v277_v39, 0.0  ;;  %v281_v47 = vmul.f32 %v773_v15, %v773_v15  ;;  %v282_v49 = vmul.f32 %v778_v18, %v778_v18 }
  0x19   : > { %246 = vadd.xlane.f32.xlu0 %v245_v17  ;;  %v300_v43 = vsel %vm239_vm0, %v279_v37, 0.0  ;;  %v297_v50 = vadd.f32 %v296_v46, %v276_v44  ;;  %v308_v51 = vsel %vm239_vm0, %v283_v45, 0.0  ;;  %v280_v52 = vmul.f32 %v783_v20, %v783_v20 }
  0x1a   : > { %v301_v48 = vadd.f32 %v300_v43, %v278_v41  ;;  %v287_v53 = vmul.f32 %v788_v22, %v788_v22  ;;  %v304_v54 = vsel %vm239_vm0, %v281_v47, 0.0  ;;  %v285_v55 = vmul.f32 %v791_v23, %v791_v23 }
  0x1b   : > { %v309_v56 = vadd.f32 %v308_v51, %v282_v49  ;;  %v286_v57 = vmul.f32 %v796_v26, %v796_v26  ;;  %v305_v58 = vadd.f32 %v304_v54, %v280_v52  ;;  %v284_v60 = vmul.f32 %v803_v29, %v803_v29 }
  0x1c   : > { %262 = vadd.xlane.f32.xlu1 %v261_v24  ;;  %v316_v59 = vsel %vm239_vm0, %v287_v53, 0.0  ;;  %v312_v61 = vsel %vm239_vm0, %v285_v55, 0.0  ;;  %v696_v3 = vmov 0  }
  0x1d   : > { %258 = vadd.xlane.f32.xlu0 %v257_v25  ;;  %v317_v62 = vadd.f32 %v316_v59, %v286_v57  ;;  %v313_v63 = vadd.f32 %v312_v61, %v284_v60  ;;  %671 = vset.pattern.permute.xlu1 %v696_v3 }
  0x1e   : > { %670 = vset.pattern.permute.xlu0 %v696_v3 }
  0x20   : > { %270 = vadd.xlane.f32.xlu1 %v269_v32 }
  0x21   : > { %266 = vadd.xlane.f32.xlu0 %v265_v34 }
  0x24   : > { %294 = vadd.xlane.f32.xlu1 %v293_v40 }
  0x25   : > { %290 = vadd.xlane.f32.xlu0 %v289_v42 }
  0x28   : > { %302 = vadd.xlane.f32.xlu1 %v301_v48 }
  0x29   : > { %298 = vadd.xlane.f32.xlu0 %v297_v50 }
  0x2c   : > { %310 = vadd.xlane.f32.xlu1 %v309_v56 }
  0x2d   : > { %306 = vadd.xlane.f32.xlu0 %v305_v58 }
  0x30   : > { %318 = vadd.xlane.f32.xlu1 %v317_v62 }
  0x31   : > { %314 = vadd.xlane.f32.xlu0 %v313_v63 }
  0xa1   : > { %v251_v7 = vpop.xlane.xlu1 %250 }
  0xa2   : > { %v243_v8 = vpop.xlane.xlu0 %242  ;;  %v855_v32 = vmul.f32 0.0051020407, %v251_v7 }
  0xa3   : > { %v849_v24 = vmul.f32 0.0051020407, %v243_v8 }
  0xa4   : > { %v354_v44 = vmul.f32 %v855_v32, %v855_v32 }
  0xa5   : > { %v255_v9 = vpop.xlane.xlu1 %254  ;;  %v352_v33 = vmul.f32 %v849_v24, %v849_v24 }
  0xa6   : > { %v247_v12 = vpop.xlane.xlu0 %246  ;;  %v851_v27 = vmul.f32 0.0051020407, %v255_v9 }
  0xa7   : > { %v847_v19 = vmul.f32 0.0051020407, %v247_v12 }
  0xa8   : > { %v355_v40 = vmul.f32 %v851_v27, %v851_v27 }
  0xa9   : > { %v263_v13 = vpop.xlane.xlu1 %262  ;;  %v353_v28 = vmul.f32 %v847_v19, %v847_v19 }
  0xaa   : > { %v259_v16 = vpop.xlane.xlu0 %258  ;;  %v859_v36 = vmul.f32 0.0051020407, %v263_v13 }
  0xab   : > { %v861_v37 = vmul.f32 0.0051020407, %v259_v16 }
  0xac   : > { %v357_v49 = vmul.f32 %v859_v36, %v859_v36 }
  0xad   : > { %v271_v17 = vpop.xlane.xlu1 %270  ;;  %v356_v50 = vmul.f32 %v861_v37, %v861_v37 }
  0xae   : > { %v267_v21 = vpop.xlane.xlu0 %266  ;;  %v871_v54 = vmul.f32 0.0051020407, %v271_v17 }
  0xaf   : > { %v873_v58 = vmul.f32 0.0051020407, %v267_v21 }
  0xb0   : > { %v359_v8 = vmul.f32 %v871_v54, %v871_v54 }
  0xb1   : > { %v295_v25 = vpop.xlane.xlu1 %294  ;;  %v358_v16 = vmul.f32 %v873_v58, %v873_v58 }
  0xb2   : > { %v345_v30 = vmul.f32 0.0051020407, %v295_v25  ;;  %v291_v31 = vpop.xlane.xlu0 %290 }
  0xb3   : > { %v344_v34 = vmul.f32 0.0051020407, %v291_v31 }
  0xb4   : > { %v361_v35 = vsub.f32 %v345_v30, %v353_v28 }
  0xb5   : > { %v360_v38 = vsub.f32 %v344_v34, %v352_v33  ;;  %v303_v39 = vpop.xlane.xlu1 %302  ;;  %v393_v34 = vld [vmem:[%s883_s22 + $0x8] sm:$0xff] }
  0xb6   : > { %v369_v41 = vmax.f32 %v361_v35, 0.0  ;;  %v347_v42 = vmul.f32 0.0051020407, %v303_v39  ;;  %v299_v43 = vpop.xlane.xlu0 %298  ;;  %v392_v35 = vld [vmem:[%s883_s22] sm:$0xff] }
  0xb7   : > { %v368_v45 = vmax.f32 %v360_v38, 0.0  ;;  %v346_v46 = vmul.f32 0.0051020407, %v299_v43 }
  0xb8   : > { %v377_v47 = vadd.f32 0.001, %v369_v41  ;;  %v363_v48 = vsub.f32 %v347_v42, %v355_v40 }
  0xb9   : > { %v376_v51 = vadd.f32 0.001, %v368_v45  ;;  %v362_v52 = vsub.f32 %v346_v46, %v354_v44  ;;  %v311_v53 = vpop.xlane.xlu1 %310  ;;  %v409_v44 = vld [vmem:[%s890_s25 + $0x8] sm:$0xff]  ;;  %v395_v45 = vld [vmem:[%s883_s22 + $0x18] sm:$0xff] }
  0xba   : > { %672 = vrsqrt.f32 %v377_v47  ;;  %v371_v55 = vmax.f32 %v363_v48, 0.0  ;;  %v349_v56 = vmul.f32 0.0051020407, %v311_v53  ;;  %v307_v57 = vpop.xlane.xlu0 %306  ;;  %v394_v47 = vld [vmem:[%s883_s22 + $0x10] sm:$0xff] }
  0xbb   : > { %674 = vrsqrt.f32 %v376_v51  ;;  %v370_v59 = vmax.f32 %v362_v52, 0.0  ;;  %v348_v60 = vmul.f32 0.0051020407, %v307_v57 }
  0xbc   : > { %v379_v61 = vadd.f32 0.001, %v371_v55  ;;  %v365_v62 = vsub.f32 %v349_v56, %v357_v49  ;;  %v411_v55 = vld [vmem:[%s890_s25 + $0x18] sm:$0xff]  ;;  %v397_v56 = vld [vmem:[%s883_s22 + $0x28] sm:$0xff] }
  0xbd   : > { %v378_v63 = vadd.f32 0.001, %v370_v59  ;;  %v364_v3 = vsub.f32 %v348_v60, %v356_v50  ;;  %v319_v7 = vpop.xlane.xlu1 %318 }
  0xbe   : > { %676 = vrsqrt.f32 %v379_v61  ;;  %v373_v9 = vmax.f32 %v365_v62, 0.0  ;;  %v351_v12 = vmul.f32 0.0051020407, %v319_v7  ;;  %v315_v13 = vpop.xlane.xlu0 %314  ;;  %v413_v61 = vld [vmem:[%s890_s25 + $0x28] sm:$0xff]  ;;  %v399_v62 = vld [vmem:[%s883_s22 + $0x38] sm:$0xff]  ;;  %v396_v7 = vld [vmem:[%s883_s22 + $0x20] sm:$0xff] }
  0xbf   : > { %678 = vrsqrt.f32 %v378_v63  ;;  %v372_v17 = vmax.f32 %v364_v3, 0.0  ;;  %v350_v21 = vmul.f32 0.0051020407, %v315_v13  ;;  %v415_v13 = vld [vmem:[%s890_s25 + $0x38] sm:$0xff] }
  0xc0   : > { %v381_v25 = vadd.f32 0.001, %v373_v9  ;;  %v367_v28 = vsub.f32 %v351_v12, %v359_v8 }
  0xc1   : > { %v380_v30 = vadd.f32 0.001, %v372_v17  ;;  %v366_v31 = vsub.f32 %v350_v21, %v358_v16 }
  0xc2   : > { %680 = vrsqrt.f32 %v381_v25  ;;  %v375_v33 = vmax.f32 %v367_v28, 0.0  ;;  %v398_v25 = vld [vmem:[%s883_s22 + $0x30] sm:$0xff] }
  0xc3   : > { %682 = vrsqrt.f32 %v380_v30  ;;  %v374_v41 = vmax.f32 %v366_v31, 0.0  ;;  %v408_v30 = vld [vmem:[%s890_s25] sm:$0xff] }
  0xc4   : > { %v673_v38 = vpop.eup %672  ;;  %v383_v39 = vadd.f32 0.001, %v375_v33 }
  0xc5   : > { %v675_v40 = vpop.eup %674  ;;  %v401_v42 = vmul.f32 %v673_v38, %v393_v34  ;;  %v382_v50 = vadd.f32 0.001, %v374_v41  ;;  %v410_v34 = vld [vmem:[%s890_s25 + $0x10] sm:$0xff]  ;;  %v412_v38 = vld [vmem:[%s890_s25 + $0x20] sm:$0xff] }
  0xc6   : > { %684 = vrsqrt.f32 %v383_v39  ;;  %v400_v43 = vmul.f32 %v675_v40, %v392_v35  ;;  %v414_v41 = vld [vmem:[%s890_s25 + $0x30] sm:$0xff] }
  0xc7   : > { %439 = vperm.xlu1 %671, %v401_v42   ;;  %v417_v46 = vmul.f32 %v401_v42, %v847_v19  ;;  %686 = vrsqrt.f32 %v382_v50 }
  0xc8   : > { %v677_v48 = vpop.eup %676  ;;  %434 = vperm.xlu0 %670, %v400_v43   ;;  %v416_v28 = vmul.f32 %v400_v43, %v849_v24 }
  0xc9   : > { %v679_v49 = vpop.eup %678  ;;  %v425_v51 = vsub.f32 %v409_v44, %v417_v46  ;;  %v403_v52 = vmul.f32 %v677_v48, %v395_v45 }
  0xca   : > { %v402_v53 = vmul.f32 %v679_v49, %v394_v47  ;;  %v424_v31 = vsub.f32 %v408_v30, %v416_v28 }
  0xcb   : > { %v419_v57 = vmul.f32 %v403_v52, %v851_v27 }
  0xcc   : > { %v681_v59 = vpop.eup %680  ;;  %495 = vperm.xlu0 %670, %v425_v51   ;;  %444 = vperm.xlu1 %671, %v402_v53   ;;  %v418_v33 = vmul.f32 %v402_v53, %v855_v32 }
  0xcd   : > { %v427_v19 = vsub.f32 %v411_v55, %v419_v57  ;;  %v405_v60 = vmul.f32 %v681_v59, %v397_v56  ;;  %v683_v63 = vpop.eup %682 }
  0xce   : > { %v404_v12 = vmul.f32 %v683_v63, %v396_v7 }
  0xcf   : > { %v421_v3 = vmul.f32 %v405_v60, %v859_v36 }
  0xd0   : > { %v685_v8 = vpop.eup %684  ;;  %505 = vperm.xlu0 %670, %v427_v19   ;;  %449 = vperm.xlu1 %671, %v403_v52   ;;  %v420_v35 = vmul.f32 %v404_v12, %v861_v37 }
  0xd1   : > { %v429_v9 = vsub.f32 %v413_v61, %v421_v3  ;;  %v407_v27 = vmul.f32 %v685_v8, %v399_v62  ;;  %v687_v21 = vpop.eup %686 }
  0xd2   : > { %v406_v36 = vmul.f32 %v687_v21, %v398_v25  ;;  %v428_v39 = vsub.f32 %v412_v38, %v420_v35 }
  0xd3   : > { %v423_v16 = vmul.f32 %v407_v27, %v871_v54  ;;  %v426_v54 = vsub.f32 %v410_v34, %v418_v33 }
  0xd4   : > { %515 = vperm.xlu0 %670, %v429_v9   ;;  %454 = vperm.xlu1 %671, %v404_v12   ;;  %v422_v40 = vmul.f32 %v406_v36, %v873_v58 }
  0xd5   : > { %v431_v17 = vsub.f32 %v415_v13, %v423_v16 }
  0xd6   : > { %v430_v42 = vsub.f32 %v414_v41, %v422_v40 }
  0xd8   : > { %525 = vperm.xlu0 %670, %v431_v17   ;;  %459 = vperm.xlu1 %671, %v405_v60  }
  0xdc   : > { %464 = vperm.xlu1 %671, %v406_v36  }
  0xe0   : > { %469 = vperm.xlu1 %671, %v407_v27  }
  0xe4   : > { %490 = vperm.xlu1 %671, %v424_v31  }
  0xe8   : > { %500 = vperm.xlu1 %671, %v426_v54  }
  0xec   : > { %510 = vperm.xlu1 %671, %v428_v39  }
  0xf0   : > { %520 = vperm.xlu1 %671, %v430_v42  }
 0x146   : > { %v440_v24 = vpop.permute.xlu1 %439 }
 0x147   : > { %v435_v43 = vpop.permute.xlu0 %434  ;;  %v474_v44 = vmul.f32 %v440_v24, %v761_v10  ;;  %v475_v32 = vmul.f32 %v440_v24, %v764_v11 }
 0x14b   : > { %v445_v45 = vpop.permute.xlu1 %444  ;;  %v496_v37 = vpop.permute.xlu0 %495 }
 0x14c   : > { %v530_v58 = vadd.f32 %v496_v37, %v474_v44  ;;  %v531_v46 = vadd.f32 %v496_v37, %v475_v32  ;;  %v476_v9 = vmul.f32 %v445_v45, %v736_v0 }
 0x14e   : > { %546 = vst [vmem:[%s921_s28 + $0x10] sm:$0xff] %v530_v58  ;;  %547 = vst.msk [vmem:[%s921_s28 + $0x18] sm:$0xff] %vm239_vm0, %v531_v46 }
 0x14f   : > { %v450_v10 = vpop.permute.xlu1 %449  ;;  %v506_v48 = vpop.permute.xlu0 %505 }
 0x150   : > { %v478_v11 = vmul.f32 %v450_v10, %v750_v5  ;;  %v479_v47 = vmul.f32 %v450_v10, %v753_v6 }
 0x152   : > { %v534_v49 = vadd.f32 %v506_v48, %v478_v11  ;;  %v535_v50 = vadd.f32 %v506_v48, %v479_v47 }
 0x153   : > { %v455_v51 = vpop.permute.xlu1 %454  ;;  %v516_v56 = vpop.permute.xlu0 %515 }
 0x154   : > { %550 = vst [vmem:[%s921_s28 + $0x30] sm:$0xff] %v534_v49  ;;  %551 = vst.msk [vmem:[%s921_s28 + $0x38] sm:$0xff] %vm239_vm0, %v535_v50  ;;  %v480_v27 = vmul.f32 %v455_v51, %v783_v20  ;;  %v481_v12 = vmul.f32 %v455_v51, %v773_v15 }
 0x157   : > { %v460_v52 = vpop.permute.xlu1 %459  ;;  %v526_v61 = vpop.permute.xlu0 %525 }
 0x158   : > { %v482_v53 = vmul.f32 %v460_v52, %v778_v18  ;;  %v483_v55 = vmul.f32 %v460_v52, %v770_v14  ;;  %v472_v18 = vmul.f32 %v435_v43, %v742_v2  ;;  %v473_v14 = vmul.f32 %v435_v43, %v747_v4 }
 0x15a   : > { %v538_v57 = vadd.f32 %v516_v56, %v482_v53  ;;  %v539_v5 = vadd.f32 %v516_v56, %v483_v55 }
 0x15b   : > { %v465_v59 = vpop.permute.xlu1 %464 }
 0x15c   : > { %554 = vst [vmem:[%s921_s28 + $0x50] sm:$0xff] %v538_v57  ;;  %555 = vst.msk [vmem:[%s921_s28 + $0x58] sm:$0xff] %vm239_vm0, %v539_v5  ;;  %v485_v17 = vmul.f32 %v465_v59, %v791_v23 }
 0x15f   : > { %v470_v6 = vpop.permute.xlu1 %469 }
 0x160   : > { %v486_v19 = vmul.f32 %v470_v6, %v796_v26  ;;  %v487_v60 = vmul.f32 %v470_v6, %v788_v22  ;;  %v477_v22 = vmul.f32 %v445_v45, %v739_v1  ;;  %v484_v1 = vmul.f32 %v465_v59, %v803_v29 }
 0x162   : > { %v542_v62 = vadd.f32 %v526_v61, %v486_v19  ;;  %v543_v63 = vadd.f32 %v526_v61, %v487_v60 }
 0x163   : > { %v491_v3 = vpop.permute.xlu1 %490 }
 0x164   : > { %558 = vst [vmem:[%s921_s28 + $0x70] sm:$0xff] %v542_v62  ;;  %559 = vst.msk [vmem:[%s921_s28 + $0x78] sm:$0xff] %vm239_vm0, %v543_v63  ;;  %v528_v7 = vadd.f32 %v491_v3, %v472_v18  ;;  %v529_v8 = vadd.f32 %v491_v3, %v473_v14 }
 0x166   : > { %544 = vst [vmem:[%s921_s28] sm:$0xff] %v528_v7  ;;  %545 = vst.msk [vmem:[%s921_s28 + $0x8] sm:$0xff] %vm239_vm0, %v529_v8 }
 0x167   : > { %v501_v2 = vpop.permute.xlu1 %500 }
 0x168   : > { %v532_v4 = vadd.f32 %v501_v2, %v476_v9  ;;  %v533_v26 = vadd.f32 %v501_v2, %v477_v22 }
 0x16a   : > { %548 = vst [vmem:[%s921_s28 + $0x20] sm:$0xff] %v532_v4  ;;  %549 = vst.msk [vmem:[%s921_s28 + $0x28] sm:$0xff] %vm239_vm0, %v533_v26 }
 0x16b   : > { %v511_v0 = vpop.permute.xlu1 %510 }
 0x16c   : > { %v536_v13 = vadd.f32 %v511_v0, %v480_v27  ;;  %v537_v16 = vadd.f32 %v511_v0, %v481_v12 }
 0x16e   : > { %552 = vst [vmem:[%s921_s28 + $0x40] sm:$0xff] %v536_v13  ;;  %553 = vst.msk [vmem:[%s921_s28 + $0x48] sm:$0xff] %vm239_vm0, %v537_v16 }
 0x16f   : > { %v521_v21 = vpop.permute.xlu1 %520 }
 0x170   : > { %v540_v25 = vadd.f32 %v521_v21, %v484_v1  ;;  %v541_v36 = vadd.f32 %v521_v21, %v485_v17 }
 0x172   : > { %556 = vst [vmem:[%s921_s28 + $0x60] sm:$0xff] %v540_v25  ;;  %557 = vst.msk [vmem:[%s921_s28 + $0x68] sm:$0xff] %vm239_vm0, %v541_v36 }
 0x173 PF: > { %s13_s12 = sadd.s32 1, %s694_s12  }
 0x174   : > { %p10_p4 = scmp.ge.s32.totalorder %s13_s12, 4  }
 0x176   :  { %12 = sbr.rel (!%p10_p4) target bundleno = 1 (0x1), region = 68 }

</bundles_post_ra>
